<compile_context>
chip_gen: v7x
topology: tpu7x:2x2x1
jax: 0.10.0
libtpu: 0.0.40
codegen_flags: <defaults>
</compile_context>

<pallas_src>
import numpy as np
import jax
import jax.numpy as jnp
from jax import lax
from jax.experimental import pallas as pl
from jax.experimental.pallas import tpu as pltpu

# ---- model hyper-parameters (small, synthetic) -------------------------------
HEADS = 2
DIM_HEAD = 16
INNER = HEADS * DIM_HEAD        # 32
D_MODEL = INNER                 # torch forward's reshape(B, N, C) requires C == inner_dim
B, N = 2, 8
EPS = 1e-12                     # torch F.normalize eps


def _make_attention_kernel(heads, dim_head, inner):
    """Build a single-invocation kernel (no grid); head loop is statically unrolled."""

    def kernel(scale_ref, x_ref, wqkv_ref, bqkv_ref, wout_ref, mask_ref, o_ref):
        # scale_ref : SMEM (heads,)            exp(clamp(logit_scale, max=log(100)))
        # x_ref     : VMEM (B*N, C)
        # wqkv_ref  : VMEM (C, 3*inner)
        # bqkv_ref  : VMEM (1, 3*inner)
        # wout_ref  : VMEM (inner, C)
        # mask_ref  : VMEM (B*N, B*N)           additive bias: 0 same-batch, -inf cross-batch
        # o_ref     : VMEM (B*N, C)
        x = x_ref[...]                                            # (B*N, C)

        # combined q/k/v projection for all rows: one MXU push + one bias add
        qkv = jnp.dot(x, wqkv_ref[...],
                      preferred_element_type=jnp.float32) + bqkv_ref[...]   # (B*N, 3*inner)
        bias = mask_ref[...]                                      # (B*N, B*N)

        acc = None
        for h in range(heads):                                    # static unroll over heads
            c0 = h * dim_head
            qh = qkv[:, c0:c0 + dim_head]                         # (B*N, dh) lane slices —
            kh = qkv[:, inner + c0:inner + c0 + dim_head]         # all within one 128-lane
            vh = qkv[:, 2 * inner + c0:2 * inner + c0 + dim_head] # vreg group

            # F.normalize(., dim=-1): x / max(||x||, eps) == x * rsqrt(max(sumsq, eps^2));
            # fold the per-head logit scale into the small q tile (not the scores).
            q_scl = scale_ref[h] * lax.rsqrt(
                jnp.maximum(jnp.sum(qh * qh, axis=-1, keepdims=True), EPS * EPS))
            k_scl = lax.rsqrt(
                jnp.maximum(jnp.sum(kh * kh, axis=-1, keepdims=True), EPS * EPS))
            qh = qh * q_scl
            kh = kh * k_scl

            # cosine-similarity logits for all batches at once: (B*N, B*N).
            # Cross-batch entries get -inf and exp to exactly 0, so per-row softmax
            # equals the per-batch softmax of the reference.
            s = lax.dot_general(qh, kh, (((1,), (1,)), ((), ())),
                                preferred_element_type=jnp.float32) + bias

            # softmax(dim=-1); approximate reciprocal rides the idle EUP slot
            p = jnp.exp(s - jnp.max(s, axis=-1, keepdims=True))
            p = p * pl.reciprocal(jnp.sum(p, axis=-1, keepdims=True), approx=True)

            ho = jnp.dot(p, vh, preferred_element_type=jnp.float32)          # (B*N, dh)
            # accumulate output projection per head (replaces concatenate);
            # wout row slice is sublane-aligned (dh multiple of 8).
            contrib = jnp.dot(ho, wout_ref[c0:c0 + dim_head, :],
                              preferred_element_type=jnp.float32)            # (B*N, C)
            acc = contrib if acc is None else acc + contrib

        o_ref[...] = acc.astype(o_ref.dtype)

    return kernel


@jax.jit
def attention_forward(x, w_qkv, b_qkv, w_out, logit_scale):
    """x: (B, N, C) float32.  w_qkv: (C, 3*inner), b_qkv: (3*inner,), w_out: (inner, C),
    logit_scale: (heads, 1, 1)."""
    Bx, Nx, Cx = x.shape
    inner = w_out.shape[0]
    heads = logit_scale.shape[0]
    dim_head = inner // heads

    # clamp(logit_scale, max=log(1/0.01)).exp() — per-head scalars, SMEM-resident
    scale = jnp.exp(jnp.minimum(logit_scale.reshape(heads),
                                jnp.log(1.0 / 0.01))).astype(jnp.float32)

    # wrapper-side (free) layout plumbing: flatten batch*seq, reshape bias,
    # build the cross-batch additive mask (0 within a batch, -inf across batches).
    x2d = x.reshape(Bx * Nx, Cx)
    b_qkv2d = b_qkv.reshape(1, 3 * inner)
    row_batch = jnp.arange(Bx * Nx, dtype=jnp.int32) // Nx
    mask_bias = jnp.where(row_batch[:, None] == row_batch[None, :],
                          0.0, -jnp.inf).astype(jnp.float32)      # (B*N, B*N)

    kernel = _make_attention_kernel(heads, dim_head, inner)

    vmem = pl.BlockSpec(memory_space=pltpu.MemorySpace.VMEM)
    out2d = pl.pallas_call(
        kernel,
        out_shape=jax.ShapeDtypeStruct((Bx * Nx, Cx), jnp.float32),
        in_specs=[pl.BlockSpec(memory_space=pltpu.MemorySpace.SMEM),  # per-head scale
                  vmem,                                               # x2d
                  vmem, vmem,                                         # w_qkv, b_qkv
                  vmem,                                               # w_out
                  vmem],                                              # mask_bias
        out_specs=vmem,
    )(scale, x2d, w_qkv, b_qkv2d, w_out, mask_bias)

    return out2d.reshape(Bx, Nx, Cx)


def reference_forward(x, w_qkv, b_qkv, w_out, logit_scale):
    """Pure-JAX transcription of the PyTorch forward, used for validation."""
    Bx, Nx, Cx = x.shape
    qkv = x @ w_qkv + b_qkv
    qkv = qkv.reshape(Bx, Nx, 3, HEADS, DIM_HEAD).transpose(2, 0, 3, 1, 4)
    q, k, v = qkv[0], qkv[1], qkv[2]
    qn = q / jnp.maximum(jnp.linalg.norm(q, axis=-1, keepdims=True), EPS)
    kn = k / jnp.maximum(jnp.linalg.norm(k, axis=-1, keepdims=True), EPS)
    attn = qn @ jnp.swapaxes(kn, -2, -1)
    scale = jnp.exp(jnp.minimum(logit_scale, jnp.log(1.0 / 0.01)))   # (HEADS,1,1)
    attn = attn * scale[None, :, :, :]
    attn = jax.nn.softmax(attn, axis=-1)
    out = (attn @ v).transpose(0, 2, 1, 3).reshape(Bx, Nx, Cx)
    return out @ w_out


if __name__ == "__main__":
    key = jax.random.PRNGKey(0)
    kx, kw1, kb1, kw2 = jax.random.split(key, 4)

    x = jax.random.normal(kx, (B, N, D_MODEL), dtype=jnp.float32)

    # deterministic synthetic parameters (torch Linear stores (out,in); we store (in,out))
    w_qkv = 0.05 * jax.random.normal(kw1, (D_MODEL, 3 * INNER), dtype=jnp.float32)
    b_qkv = 0.05 * jax.random.normal(kb1, (3 * INNER,), dtype=jnp.float32)
    w_out = 0.05 * jax.random.normal(kw2, (INNER, D_MODEL), dtype=jnp.float32)
    logit_scale = jnp.log(10.0 * jnp.ones((HEADS, 1, 1), dtype=jnp.float32))

    out = attention_forward(x, w_qkv, b_qkv, w_out, logit_scale)
    out = jax.block_until_ready(out)

    ref = reference_forward(x, w_qkv, b_qkv, w_out, logit_scale)
    assert out.shape == (B, N, D_MODEL)
    # tolerance loosened slightly because the softmax uses the EUP approximate
    # reciprocal (~2^-12 relative error); structural errors would still trip this.
    np.testing.assert_allclose(np.asarray(out), np.asarray(ref), rtol=2e-3, atol=2e-3)

    print("KERNEL_OK")
</pallas_src>

<mosaic_0001>
module attributes {stable_mosaic.version = 11 : i64} {
  func.func @kernel(%arg0: memref<2xf32, #tpu.memory_space<smem>>, %arg1: memref<16x32xf32, #tpu.memory_space<vmem>>, %arg2: memref<32x96xf32, #tpu.memory_space<vmem>>, %arg3: memref<1x96xf32, #tpu.memory_space<vmem>>, %arg4: memref<32x32xf32, #tpu.memory_space<vmem>>, %arg5: memref<16x16xf32, #tpu.memory_space<vmem>>, %arg6: memref<16x32xf32, #tpu.memory_space<vmem>>) attributes {dimension_semantics = [], scalar_prefetch = 0 : i64, scratch_operands = 0 : i64, tpu.core_type = #tpu.core_type<tc>} {
    %c0 = arith.constant 0 : index
    %c0_0 = arith.constant 0 : index
    %0 = vector.load %arg1[%c0, %c0_0] : memref<16x32xf32, #tpu.memory_space<vmem>>, vector<16x32xf32>
    %c0_1 = arith.constant 0 : index
    %c0_2 = arith.constant 0 : index
    %1 = vector.load %arg2[%c0_1, %c0_2] : memref<32x96xf32, #tpu.memory_space<vmem>>, vector<32x96xf32>
    %cst = arith.constant dense<0.000000e+00> : vector<16x96xf32>
    %2 = tpu.matmul %0, %1, %cst {dimension_numbers = #tpu.dot_dimension_numbers<[1], [0], [0], [1], [0, 0, 1, 1], [], []>} : vector<16x32xf32>, vector<32x96xf32>, vector<16x96xf32> -> vector<16x96xf32>
    %c0_3 = arith.constant 0 : index
    %c0_4 = arith.constant 0 : index
    %3 = vector.load %arg3[%c0_3, %c0_4] : memref<1x96xf32, #tpu.memory_space<vmem>>, vector<1x96xf32>
    %4 = vector.broadcast %3 : vector<1x96xf32> to vector<16x96xf32>
    %5 = arith.addf %2, %4 : vector<16x96xf32>
    %c0_5 = arith.constant 0 : index
    %c0_6 = arith.constant 0 : index
    %6 = vector.load %arg5[%c0_5, %c0_6] : memref<16x16xf32, #tpu.memory_space<vmem>>, vector<16x16xf32>
    %7 = vector.extract_strided_slice %5 {offsets = [0, 0], sizes = [16, 16], strides = [1, 1]} : vector<16x96xf32> to vector<16x16xf32>
    %8 = vector.extract_strided_slice %5 {offsets = [0, 32], sizes = [16, 16], strides = [1, 1]} : vector<16x96xf32> to vector<16x16xf32>
    %9 = vector.extract_strided_slice %5 {offsets = [0, 64], sizes = [16, 16], strides = [1, 1]} : vector<16x96xf32> to vector<16x16xf32>
    %c0_7 = arith.constant 0 : index
    %10 = memref.load %arg0[%c0_7] : memref<2xf32, #tpu.memory_space<smem>>
    %11 = arith.mulf %7, %7 : vector<16x16xf32>
    %cst_8 = arith.constant dense<0.000000e+00> : vector<16xf32>
    %12 = vector.multi_reduction <add>, %11, %cst_8 [1] : vector<16x16xf32> to vector<16xf32>
    %13 = vector.shape_cast %12 : vector<16xf32> to vector<16x1xf32>
    %cst_9 = arith.constant 1.000000e-24 : f32
    %14 = vector.broadcast %cst_9 : f32 to vector<16x1xf32>
    %15 = arith.maximumf %13, %14 : vector<16x1xf32>
    %16 = math.rsqrt %15 : vector<16x1xf32>
    %17 = vector.broadcast %10 : f32 to vector<16x1xf32>
    %18 = arith.mulf %17, %16 : vector<16x1xf32>
    %19 = arith.mulf %8, %8 : vector<16x16xf32>
    %cst_10 = arith.constant dense<0.000000e+00> : vector<16xf32>
    %20 = vector.multi_reduction <add>, %19, %cst_10 [1] : vector<16x16xf32> to vector<16xf32>
    %21 = vector.shape_cast %20 : vector<16xf32> to vector<16x1xf32>
    %cst_11 = arith.constant 1.000000e-24 : f32
    %22 = vector.broadcast %cst_11 : f32 to vector<16x1xf32>
    %23 = arith.maximumf %21, %22 : vector<16x1xf32>
    %24 = math.rsqrt %23 : vector<16x1xf32>
    %25 = vector.broadcast %18 : vector<16x1xf32> to vector<16x16xf32>
    %26 = arith.mulf %7, %25 : vector<16x16xf32>
    %27 = vector.broadcast %24 : vector<16x1xf32> to vector<16x16xf32>
    %28 = arith.mulf %8, %27 : vector<16x16xf32>
    %cst_12 = arith.constant dense<0.000000e+00> : vector<16x16xf32>
    %29 = tpu.matmul %26, %28, %cst_12 {dimension_numbers = #tpu.dot_dimension_numbers<[1], [1], [0], [0], [0, 0, 1, 0], [], []>} : vector<16x16xf32>, vector<16x16xf32>, vector<16x16xf32> -> vector<16x16xf32>
    %30 = arith.addf %29, %6 : vector<16x16xf32>
    %cst_13 = arith.constant dense<0xFF800000> : vector<16xf32>
    %31 = vector.multi_reduction <maximumf>, %30, %cst_13 [1] : vector<16x16xf32> to vector<16xf32>
    %32 = vector.shape_cast %31 : vector<16xf32> to vector<16x1xf32>
    %33 = vector.broadcast %32 : vector<16x1xf32> to vector<16x16xf32>
    %34 = arith.subf %30, %33 : vector<16x16xf32>
    %35 = math.exp %34 : vector<16x16xf32>
    %cst_14 = arith.constant dense<0.000000e+00> : vector<16xf32>
    %36 = vector.multi_reduction <add>, %35, %cst_14 [1] : vector<16x16xf32> to vector<16xf32>
    %37 = vector.shape_cast %36 : vector<16xf32> to vector<16x1xf32>
    %38 = tpu.reciprocal %37 {approx = true} : vector<16x1xf32> -> vector<16x1xf32>
    %39 = vector.broadcast %38 : vector<16x1xf32> to vector<16x16xf32>
    %40 = arith.mulf %35, %39 : vector<16x16xf32>
    %cst_15 = arith.constant dense<0.000000e+00> : vector<16x16xf32>
    %41 = tpu.matmul %40, %9, %cst_15 {dimension_numbers = #tpu.dot_dimension_numbers<[1], [0], [0], [1], [0, 0, 1, 1], [], []>} : vector<16x16xf32>, vector<16x16xf32>, vector<16x16xf32> -> vector<16x16xf32>
    %c0_16 = arith.constant 0 : index
    %c0_17 = arith.constant 0 : index
    %42 = vector.load %arg4[%c0_16, %c0_17] : memref<32x32xf32, #tpu.memory_space<vmem>>, vector<16x32xf32>
    %cst_18 = arith.constant dense<0.000000e+00> : vector<16x32xf32>
    %43 = tpu.matmul %41, %42, %cst_18 {dimension_numbers = #tpu.dot_dimension_numbers<[1], [0], [0], [1], [0, 0, 1, 1], [], []>} : vector<16x16xf32>, vector<16x32xf32>, vector<16x32xf32> -> vector<16x32xf32>
    %44 = vector.extract_strided_slice %5 {offsets = [0, 16], sizes = [16, 16], strides = [1, 1]} : vector<16x96xf32> to vector<16x16xf32>
    %45 = vector.extract_strided_slice %5 {offsets = [0, 48], sizes = [16, 16], strides = [1, 1]} : vector<16x96xf32> to vector<16x16xf32>
    %46 = vector.extract_strided_slice %5 {offsets = [0, 80], sizes = [16, 16], strides = [1, 1]} : vector<16x96xf32> to vector<16x16xf32>
    %c1 = arith.constant 1 : index
    %47 = memref.load %arg0[%c1] : memref<2xf32, #tpu.memory_space<smem>>
    %48 = arith.mulf %44, %44 : vector<16x16xf32>
    %cst_19 = arith.constant dense<0.000000e+00> : vector<16xf32>
    %49 = vector.multi_reduction <add>, %48, %cst_19 [1] : vector<16x16xf32> to vector<16xf32>
    %50 = vector.shape_cast %49 : vector<16xf32> to vector<16x1xf32>
    %cst_20 = arith.constant 1.000000e-24 : f32
    %51 = vector.broadcast %cst_20 : f32 to vector<16x1xf32>
    %52 = arith.maximumf %50, %51 : vector<16x1xf32>
    %53 = math.rsqrt %52 : vector<16x1xf32>
    %54 = vector.broadcast %47 : f32 to vector<16x1xf32>
    %55 = arith.mulf %54, %53 : vector<16x1xf32>
    %56 = arith.mulf %45, %45 : vector<16x16xf32>
    %cst_21 = arith.constant dense<0.000000e+00> : vector<16xf32>
    %57 = vector.multi_reduction <add>, %56, %cst_21 [1] : vector<16x16xf32> to vector<16xf32>
    %58 = vector.shape_cast %57 : vector<16xf32> to vector<16x1xf32>
    %cst_22 = arith.constant 1.000000e-24 : f32
    %59 = vector.broadcast %cst_22 : f32 to vector<16x1xf32>
    %60 = arith.maximumf %58, %59 : vector<16x1xf32>
    %61 = math.rsqrt %60 : vector<16x1xf32>
    %62 = vector.broadcast %55 : vector<16x1xf32> to vector<16x16xf32>
    %63 = arith.mulf %44, %62 : vector<16x16xf32>
    %64 = vector.broadcast %61 : vector<16x1xf32> to vector<16x16xf32>
    %65 = arith.mulf %45, %64 : vector<16x16xf32>
    %cst_23 = arith.constant dense<0.000000e+00> : vector<16x16xf32>
    %66 = tpu.matmul %63, %65, %cst_23 {dimension_numbers = #tpu.dot_dimension_numbers<[1], [1], [0], [0], [0, 0, 1, 0], [], []>} : vector<16x16xf32>, vector<16x16xf32>, vector<16x16xf32> -> vector<16x16xf32>
    %67 = arith.addf %66, %6 : vector<16x16xf32>
    %cst_24 = arith.constant dense<0xFF800000> : vector<16xf32>
    %68 = vector.multi_reduction <maximumf>, %67, %cst_24 [1] : vector<16x16xf32> to vector<16xf32>
    %69 = vector.shape_cast %68 : vector<16xf32> to vector<16x1xf32>
    %70 = vector.broadcast %69 : vector<16x1xf32> to vector<16x16xf32>
    %71 = arith.subf %67, %70 : vector<16x16xf32>
    %72 = math.exp %71 : vector<16x16xf32>
    %cst_25 = arith.constant dense<0.000000e+00> : vector<16xf32>
    %73 = vector.multi_reduction <add>, %72, %cst_25 [1] : vector<16x16xf32> to vector<16xf32>
    %74 = vector.shape_cast %73 : vector<16xf32> to vector<16x1xf32>
    %75 = tpu.reciprocal %74 {approx = true} : vector<16x1xf32> -> vector<16x1xf32>
    %76 = vector.broadcast %75 : vector<16x1xf32> to vector<16x16xf32>
    %77 = arith.mulf %72, %76 : vector<16x16xf32>
    %cst_26 = arith.constant dense<0.000000e+00> : vector<16x16xf32>
    %78 = tpu.matmul %77, %46, %cst_26 {dimension_numbers = #tpu.dot_dimension_numbers<[1], [0], [0], [1], [0, 0, 1, 1], [], []>} : vector<16x16xf32>, vector<16x16xf32>, vector<16x16xf32> -> vector<16x16xf32>
    %c16 = arith.constant 16 : index
    %c0_27 = arith.constant 0 : index
    %79 = vector.load %arg4[%c16, %c0_27] : memref<32x32xf32, #tpu.memory_space<vmem>>, vector<16x32xf32>
    %cst_28 = arith.constant dense<0.000000e+00> : vector<16x32xf32>
    %80 = tpu.matmul %78, %79, %cst_28 {dimension_numbers = #tpu.dot_dimension_numbers<[1], [0], [0], [1], [0, 0, 1, 1], [], []>} : vector<16x16xf32>, vector<16x32xf32>, vector<16x32xf32> -> vector<16x32xf32>
    %81 = arith.addf %43, %80 : vector<16x32xf32>
    %c0_29 = arith.constant 0 : index
    %c0_30 = arith.constant 0 : index
    %82 = vector.load %arg6[%c0_29, %c0_30] : memref<16x32xf32, #tpu.memory_space<vmem>>, vector<16x32xf32>
    tpu.vector_store %arg6[%c0_29, %c0_30], %81 {strides = array<i32>} : memref<16x32xf32, #tpu.memory_space<vmem>>, vector<16x32xf32>,
    return
  }
}

</mosaic_0001>

<bundles_post_ra>
// kernel: attention_forward.1
= control target key start
LH: loop header
LB: loop body
LE: loop exit
PB: predicated region body
PF: predicated region fallthrough
CT: control target
= control target key end

     0   :  { %11 = vsyncpa [#allocation5], 0  ;;  %s1324_s0 = inlined_call_operand.vmem [shape: f32[2], index: 0, kind: input, shape index: {}]   ;;  %s1325_s1 = inlined_call_operand.hbm [shape: f32[16,32], index: 1, kind: input, shape index: {}]   ;;  %s1326_s2 = inlined_call_operand.vmem [shape: f32[32,96], index: 2, kind: input, shape index: {}]   ;;  %s1327_s3 = inlined_call_operand.vmem [shape: f32[1,96], index: 3, kind: input, shape index: {}]   ;;  %s1328_s4 = inlined_call_operand.hbm [shape: f32[32,32], index: 4, kind: input, shape index: {}]   ;;  %s1329_s5 = inlined_call_operand.vmem [shape: f32[16,16], index: 5, kind: input, shape index: {}]   ;;  %s1330_s6 = inlined_call_operand.hbm [shape: f32[16,32], index: 6, kind: output, shape index: {}]  }
   0x1   :  { %12 = vsyncpa [#allocation3], 0 }
   0x2   :  { %13 = vsyncpa [#allocation8], 0 }
   0x3   :  { %14 = vsyncpa [#allocation4], 0  ;;  %s21_s23 = sshll.u32 %s1324_s0, 4  ;;  %s22_s23 = int_to_ptr.vmem [resolvable:$true] %s21_s23 }
   0x4   :  { %s1038_s24 = scalar_lea.vmem %s22_s23, 16  ;;  %p1043_p1 = scmp.lt.s32.totalorder %s22_s23, %s22_s23 }
   0x5   :  { %p1039_p0 = scmp.ne.s32.totalorder %s22_s23, %s1038_s24  ;;  %p1044_p2 = scmp.lt.s32.totalorder %s1038_s24, %s1038_s24 }
   0x7   :  { %p1045_p3 = por %p1044_p2, %p1043_p1 }
   0x9   :  { %p1046_p4 = pnand %p1045_p3, %p1039_p0 }
   0xb   :  { %1049 = shalt.err (!%p1046_p4)
}
   0xc   :  { %s1124_s25 = smov [#allocation2]   ;;  %s1125_s26 = smov [#allocation6]  }
   0xd   :  { %24 = dma.vmem_to_smem %s22_s23, 16, %s1124_s25, [#allocation5]  }
   0xe   :  { %s30_s27 = sshll.u32 %s1125_s26, 4  ;;  %s1050_s30 = scalar_lea.hbm %s1325_s1, 256  ;;  %s31_s27 = int_to_ptr.vmem [resolvable:$true] %s30_s27 }
   0xf   :  { %p1051_p5 = scmp.ne.s32.totalorder %s1325_s1, %s1050_s30  ;;  %p1054_p6 = scmp.lt.u32.totalorder %s1050_s30, %s1325_s1 }
  0x11   :  { %p1056_p7 = pnand %p1054_p6, %p1051_p5 }
  0x13   :  { %1059 = shalt.err (!%p1056_p7)
}
  0x14   :  { %s1060_s10 = scalar_lea.vmem %s31_s27, 256  ;;  %p1065_p9 = scmp.lt.s32.totalorder %s31_s27, %s31_s27 }
  0x15   :  { %p1061_p8 = scmp.ne.s32.totalorder %s31_s27, %s1060_s10  ;;  %p1066_p10 = scmp.lt.s32.totalorder %s1060_s10, %s1060_s10 }
  0x17   :  { %p1067_p11 = por %p1066_p10, %p1065_p9 }
  0x19   :  { %p1068_p12 = pnand %p1067_p11, %p1061_p8 }
  0x1b   :  { %1071 = shalt.err (!%p1068_p12)
}
  0x1c   :  { %s1126_s11 = smov 128   ;;  %s1127_s12 = smov 8  }
  0x1d   :  { %36 = dma.hbm_to_vmem [thread:$0]  %s1325_s1, 256, %s31_s27, [#allocation3], %s1126_s11, %s1126_s11, %s1127_s12  }
  0x1e   :  { %s1128_s15 = smov [#allocation7]   ;;  %s1072_s19 = scalar_lea.hbm %s1328_s4, 512 }
  0x1f   :  { %s46_s16 = sshll.u32 %s1128_s15, 4  ;;  %p1073_p13 = scmp.ne.s32.totalorder %s1328_s4, %s1072_s19  ;;  %s47_s16 = int_to_ptr.vmem [resolvable:$true] %s46_s16 }
  0x20   :  { %p1076_p0 = scmp.lt.u32.totalorder %s1072_s19, %s1328_s4 }
  0x22   :  { %p1078_p1 = pnand %p1076_p0, %p1073_p13 }
  0x24   :  { %1081 = shalt.err (!%p1078_p1)
}
  0x25   :  { %s1082_s24 = scalar_lea.vmem %s47_s16, 512  ;;  %p1087_p3 = scmp.lt.s32.totalorder %s47_s16, %s47_s16 }
  0x26   :  { %p1083_p2 = scmp.ne.s32.totalorder %s47_s16, %s1082_s24  ;;  %p1088_p4 = scmp.lt.s32.totalorder %s1082_s24, %s1082_s24 }
  0x28   :  { %p1089_p5 = por %p1088_p4, %p1087_p3 }
  0x2a   :  { %p1090_p6 = pnand %p1089_p5, %p1083_p2 }
  0x2c   :  { %1093 = shalt.err (!%p1090_p6)
}
  0x2d   :  { %52 = dma.hbm_to_vmem [thread:$0]  %s1328_s4, 512, %s47_s16, [#allocation8], %s1126_s11, %s1126_s11, %s1127_s12  }
  0x2e   :  { %1116 = dma.done.wait [#allocation5], 16  }
  0x2f   :  { %1117 = vsyncadd [#allocation5], 4294967280 }
  0x30   :  { %1118 = dma.done.wait [#allocation3], 256  }
  0x31   :  { %1119 = vsyncadd [#allocation3], 4294967040 }
  0x32   :  { %1120 = dma.done.wait [#allocation8], 512  }
  0x33   :  { %1121 = vsyncadd [#allocation8], 4294966784 }
  0x34   :  { %64 = sfence }
  0x35   :  { %v67_v0 = vld [vmem:[%s1326_s2] sm:$0xff]  ;;  %v68_v1 = vld [vmem:[%s1326_s2 + $0x8] sm:$0xff]  ;;  %v69_v2 = vld [vmem:[%s1326_s2 + $0x10] sm:$0xff]  ;;  %vm78_vm0 = vcmask 261120   ;;  %vm165_vm1 = vcmask 130048   ;;  %s1235_s10 = sld [smem:[#allocation2]] }
  0x36   :  { %v937_v3 = vpack.c.bf16 %v68_v1, %v67_v0  ;;  %v70_v4 = vld [vmem:[%s1326_s2 + $0x18] sm:$0xff]  ;;  %v65_v5 = vld [vmem:[#allocation6] sm:$0xff]  ;;  %v66_v7 = vld [vmem:[#allocation6 + $0x8] sm:$0xff]  ;;  %s1129_s2 = smov 96   ;;  %s1131_s13 = smov 80  }
  0x37   :  { %v941_v6 = vpack.c.bf16 %v70_v4, %v69_v2  ;;  %892 = vmatprep.mubr.msk.f32.mxu0 %vm78_vm0, %v65_v5  ;;  %v834_v8 = vld [vmem:[%s1327_s3] ss:$0 sm:$0xff]  ;;  %s1130_s3 = smov 112   ;;  %vm1248_vm2 = vmpackc.low %vm165_vm1, %vm165_vm1  ;;  %v1261_v46 = vld [vmem:[%s1329_s5 + $0x8] sm:$0xff]  ;;  %s1132_s18 = smov 64  }
  0x38   :  { %938 = vmatprep.subr.bf16.mxu0 %v937_v3  ;;  %v1266_v47 = vld [vmem:[%s1329_s5] sm:$0xff]  ;;  %s843_s5 = sld [smem:[#allocation2 + $0x1]]  ;;  %s1133_s19 = smov 48  }
  0x39   :  { %940 = vmatpush3.bf16.msra.mxu0 %v937_v3  ;;  %s1134_s20 = smov [#allocation9]  }
  0x3a   :  { %942 = vmatprep.subr.bf16.mxu0 %v941_v6  ;;  %s820_s21 = sshll.u32 %s1134_s20, 4  ;;  %s821_s21 = int_to_ptr.vmem [resolvable:$true] %s820_s21 }
  0x3b   :  { %v176_v23 = vstv %s1235_s10  ;;  %s1094_s22 = scalar_lea.vmem %s821_s21, 256  ;;  %p1099_p8 = scmp.lt.s32.totalorder %s821_s21, %s821_s21 }
  0x3c   :  { %p1095_p7 = scmp.ne.s32.totalorder %s821_s21, %s1094_s22  ;;  %p1100_p9 = scmp.lt.s32.totalorder %s1094_s22, %s1094_s22 }
  0x3d   :  { %944 = vmatpush3.bf16.msra.mxu0 %v941_v6 }
  0x3e   :  { %p1101_p10 = por %p1100_p9, %p1099_p8 }
  0x40   :  { %893 = vmatmul.mubr.msk.f32.vlgmr.msra.gmra.mrb[0].mxu0 %vm78_vm0, %v66_v7  ;;  %p1102_p11 = pnand %p1101_p10, %p1095_p7 }
 0x113   :  { %v894_v9 = vpop.f32.mrb[0].mxu0 }
 0x114   :  { %v151_v10 = vpop.f32.mrb[1].mxu0  ;;  %v1222_v12 = vadd.f32 %v894_v9, %v834_v8 }
 0x115   :  { %v1220_v11 = vadd.f32 %v834_v8, %v151_v10 }
 0x116   :  { %v164_v14 = vmul.f32 %v1222_v12, %v1222_v12 }
 0x117   :  { %v163_v13 = vmul.f32 %v1220_v11, %v1220_v11 }
 0x118   :  { %v169_v20 = vsel %vm165_vm1, %v164_v14, 0.0 }
 0x119   :  { %181 = vrot.lane.b32.xlu0 %v163_v13, %s1129_s2  ;;  %v166_v15 = vsel %vm165_vm1, %v163_v13, 0.0 }
 0x11d   :  { %183 = vrot.lane.b32.xlu0 %v164_v14, %s1129_s2 }
 0x13c   :  { %167 = vadd.xlane.f32.xlu0 %v166_v15 }
 0x152   :  { %408 = vrot.lane.b32.xlu0 %v164_v14, %s1130_s3 }
 0x18b   :  { %v182_v16 = vpop.permute.xlu0 %181 }
 0x18c   :  { %v187_v17 = vsel %vm165_vm1, %v182_v16, 0.0 }
 0x18d   :  { %188 = vadd.xlane.f32.xlu1 %v187_v17 }
 0x18f   :  { %v184_v18 = vpop.permute.xlu0 %183 }
 0x190   :  { %v190_v19 = vsel %vm165_vm1, %v184_v18, 0.0 }
 0x191   :  { %191 = vadd.xlane.f32.xlu1 %v190_v19 }
 0x195   :  { %170 = vadd.xlane.f32.xlu1 %v169_v20 }
 0x1c9   :  { %v168_v21 = vpop.xlane.xlu0 %167 }
 0x1ca   :  { %v172_v22 = vmax.f32 %v168_v21, 1e-24 }
 0x1cc   :  { %1006 = vrsqrt.f32 %v172_v22  ;;  %v422_v22 = vstv %s843_s5 }
 0x1cd   :  { %v409_v60 = vpop.permute.xlu0 %408 }
 0x1ce   :  { %v415_v61 = vsel %vm165_vm1, %v409_v60, 0.0 }
 0x1d6   :  { %v1007_v24 = vpop.eup %1006 }
 0x1d7   :  { %v177_v25 = vmul.f32 %v1007_v24, %v176_v23 }
 0x1d9   :  { %v197_v26 = vmul.f32 %v177_v25, %v1220_v11 }
 0x1db   :  { %899 = vmatprep.mubr.msk.f32.mxu1 %vm165_vm1, %v197_v26 }
 0x21a   :  { %v189_v27 = vpop.xlane.xlu1 %188 }
 0x21b   :  { %v193_v28 = vmax.f32 %v189_v27, 1e-24 }
 0x21d   :  { %1008 = vrsqrt.f32 %v193_v28  ;;  %v991_v28 = vpack.i.bf16 %v1222_v12, %v1220_v11 }
 0x21e   :  { %v192_v29 = vpop.xlane.xlu1 %191 }
 0x21f   :  { %v194_v30 = vmax.f32 %v192_v29, 1e-24 }
 0x221   :  { %1010 = vrsqrt.f32 %v194_v30 }
 0x222   :  { %v171_v36 = vpop.xlane.xlu1 %170 }
 0x223   :  { %v173_v37 = vmax.f32 %v171_v36, 1e-24 }
 0x225   :  { %1012 = vrsqrt.f32 %v173_v37 }
 0x227   :  { %v1009_v31 = vpop.eup %1008 }
 0x228   :  { %v199_v33 = vmul.f32 %v1009_v31, %v1220_v11 }
 0x22b   :  { %v1011_v32 = vpop.eup %1010 }
 0x22c   :  { %v200_v34 = vmul.f32 %v1011_v32, %v1222_v12 }
 0x22e   :  { %v986_v35 = vpack.i.bf16 %v200_v34, %v199_v33 }
 0x22f   :  { %v1013_v43 = vpop.eup %1012 }
 0x230   :  { %987 = vrot.lane.b32.xlu1 %v986_v35, %s1129_s2  ;;  %v178_v44 = vmul.f32 %v1013_v43, %v176_v23 }
 0x232   :  { %v198_v45 = vmul.f32 %v178_v44, %v1222_v12 }
 0x234   :  { %425 = vrot.lane.b32.xlu1 %v163_v13, %s1131_s13 }
 0x238   :  { %427 = vrot.lane.b32.xlu1 %v164_v14, %s1131_s13 }
 0x23c   :  { %406 = vrot.lane.b32.xlu1 %v163_v13, %s1130_s3 }
 0x2a2   :  { %v988_v38 = vpop.permute.xlu1 %987 }
 0x2a3   :  { %v990_v39 = vunpack.i.h.bf16 %v988_v38  ;;  %v989_v40 = vunpack.i.l.bf16 %v988_v38 }
 0x2a5   :  { %v945_v42 = vpack.c.bf16 %v990_v39, %v989_v40 }
 0x2a6   :  { %v426_v49 = vpop.permute.xlu1 %425 }
 0x2a7   :  { %947 = vmatprep.subr.msk.bf16.mxu1 %vm1248_vm2, %v945_v42  ;;  %v431_v56 = vsel %vm165_vm1, %v426_v49, 0.0 }
 0x2a8   :  { %950 = vmatpush3.bf16.xpose.msk.msra.mxu1 %vm1248_vm2, %v945_v42 }
 0x2aa   :  { %v428_v55 = vpop.permute.xlu1 %427 }
 0x2ab   :  { %v434_v57 = vsel %vm165_vm1, %v428_v55, 0.0 }
 0x2ae   :  { %v407_v58 = vpop.permute.xlu1 %406 }
 0x2af   :  { %900 = vmatmul.mubr.msk.f32.vlgmr.msra.gmra.mrb[0].mxu1 %vm165_vm1, %v198_v45  ;;  %v412_v59 = vsel %vm165_vm1, %v407_v58, 0.0 }
 0x382   :  { %v901_v48 = vpop.f32.mrb[0].mxu1 }
 0x383   :  { %v289_v50 = vadd.f32 %v901_v48, %v1261_v46  ;;  %v283_v51 = vpop.f32.mrb[1].mxu1 }
 0x384   :  { %v284_v52 = vadd.f32 %v283_v51, %v1266_v47 }
 0x385   :  { %v295_v53 = vsel %vm165_vm1, %v289_v50, -inf }
 0x386   :  { %296 = vmax.xlane.f32.xlu0 %v295_v53  ;;  %v292_v54 = vsel %vm165_vm1, %v284_v52, -inf }
 0x387   :  { %293 = vmax.xlane.f32.xlu1 %v292_v54 }
 0x38b   :  { %432 = vadd.xlane.f32.xlu1 %v431_v56 }
 0x38f   :  { %435 = vadd.xlane.f32.xlu1 %v434_v57 }
 0x393   :  { %413 = vadd.xlane.f32.xlu1 %v412_v59 }
 0x397   :  { %416 = vadd.xlane.f32.xlu1 %v415_v61 }
 0x413   :  { %v297_v62 = vpop.xlane.xlu0 %296 }
 0x414   :  { %v299_v63 = vsub.f32 %v289_v50, %v297_v62  ;;  %v294_v0 = vpop.xlane.xlu1 %293 }
 0x415   :  { %v298_v1 = vsub.f32 %v284_v52, %v294_v0 }
 0x416   :  { %v302_v2 = vmul.f32 1.442695, %v299_v63 }
 0x417   :  { %v300_v3 = vmul.f32 1.442695, %v298_v1 }
 0x418   :  { %1014 = vpow2.f32 %v302_v2  ;;  %v433_v4 = vpop.xlane.xlu1 %432  ;;  %v649_v2 = vld [vmem:[#allocation7 + $0x10] sm:$0xff] }
 0x419   :  { %1016 = vpow2.f32 %v300_v3  ;;  %v437_v7 = vmax.f32 %v433_v4, 1e-24  ;;  %v650_v3 = vld [vmem:[#allocation7 + $0x18] sm:$0xff] }
 0x41c   :  { %v436_v5 = vpop.xlane.xlu1 %435 }
 0x41d   :  { %v438_v6 = vmax.f32 %v436_v5, 1e-24 }
 0x41f   :  { %1018 = vrsqrt.f32 %v438_v6 }
 0x420   :  { %v414_v8 = vpop.xlane.xlu1 %413  ;;  %1020 = vrsqrt.f32 %v437_v7  ;;  %v965_v7 = vpack.c.bf16 %v650_v3, %v649_v2 }
 0x421   :  { %v418_v10 = vmax.f32 %v414_v8, 1e-24 }
 0x422   :  { %v1015_v9 = vpop.eup %1014 }
 0x423   :  { %v1017_v13 = vpop.eup %1016  ;;  %v307_v14 = vsel %vm165_vm1, %v1015_v9, 0.0  ;;  %1022 = vrsqrt.f32 %v418_v10 }
 0x424   :  { %308 = vadd.xlane.f32.xlu1 %v307_v14  ;;  %v304_v15 = vsel %vm165_vm1, %v1017_v13, 0.0  ;;  %v417_v16 = vpop.xlane.xlu1 %416  ;;  %v403_v14 = vld [vmem:[#allocation7] sm:$0xff] }
 0x425   :  { %305 = vadd.xlane.f32.xlu0 %v304_v15  ;;  %v419_v17 = vmax.f32 %v417_v16, 1e-24  ;;  %v404_v15 = vld [vmem:[#allocation7 + $0x8] sm:$0xff] }
 0x426   :  { %v969_v16 = vpack.c.bf16 %v404_v15, %v403_v14 }
 0x427   :  { %1024 = vrsqrt.f32 %v419_v17 }
 0x429   :  { %v1019_v18 = vpop.eup %1018 }
 0x42a   :  { %v1021_v19 = vpop.eup %1020  ;;  %v444_v20 = vmul.f32 %v1019_v18, %v1222_v12 }
 0x42b   :  { %v443_v23 = vmul.f32 %v1021_v19, %v1220_v11 }
 0x42d   :  { %v1023_v21 = vpop.eup %1022  ;;  %v996_v24 = vpack.i.bf16 %v444_v20, %v443_v23 }
 0x42e   :  { %v423_v25 = vmul.f32 %v1023_v21, %v422_v22 }
 0x430   :  { %v441_v27 = vmul.f32 %v423_v25, %v1220_v11 }
 0x431   :  { %v1025_v26 = vpop.eup %1024 }
 0x432   :  { %v424_v29 = vmul.f32 %v1025_v26, %v422_v22 }
 0x434   :  { %v442_v30 = vmul.f32 %v424_v29, %v1222_v12 }
 0x435   :  { %997 = vrot.lane.b32.xlu1 %v996_v24, %s1131_s13 }
 0x439   :  { %447 = vrot.lane.b32.xlu1 %v441_v27, %s1130_s3 }
 0x43b   :  { %992 = vrot.lane.b32.xlu0 %v991_v28, %s1132_s18 }
 0x43f   :  { %449 = vrot.lane.b32.xlu0 %v442_v30, %s1130_s3 }
 0x4b1   :  { %v309_v31 = vpop.xlane.xlu1 %308 }
 0x4b2   :  { %1026 = vrcp.f32 %v309_v31  ;;  %v306_v32 = vpop.xlane.xlu0 %305 }
 0x4b3   :  { %1028 = vrcp.f32 %v306_v32 }
 0x4b5   :  { %v998_v33 = vpop.permute.xlu1 %997 }
 0x4b6   :  { %v993_v34 = vpop.permute.xlu0 %992  ;;  %v1000_v35 = vunpack.i.h.bf16 %v998_v33  ;;  %v999_v36 = vunpack.i.l.bf16 %v998_v33 }
 0x4b7   :  { %v995_v37 = vunpack.i.h.bf16 %v993_v34  ;;  %v994_v38 = vunpack.i.l.bf16 %v993_v34 }
 0x4b8   :  { %v955_v40 = vpack.c.bf16 %v1000_v35, %v999_v36 }
 0x4b9   :  { %v951_v39 = vpack.c.bf16 %v995_v37, %v994_v38  ;;  %v448_v44 = vpop.permute.xlu1 %447 }
 0x4ba   :  { %v450_v45 = vpop.permute.xlu0 %449 }
 0x4bb   :  { %952 = vmatprep.subr.bf16.mxu1 %v951_v39 }
 0x4bc   :  { %v1027_v11 = vpop.eup %1026  ;;  %954 = vmatpush3.bf16.msra.mxu1 %v951_v39 }
 0x4bd   :  { %v1029_v42 = vpop.eup %1028  ;;  %957 = vmatprep.subr.msk.bf16.mxu1 %vm1248_vm2, %v955_v40  ;;  %v313_v43 = vmul.f32 %v1027_v11, %v1015_v9 }
 0x4be   :  { %v312_v12 = vmul.f32 %v1029_v42, %v1017_v13 }
 0x4c0   :  { %906 = vmatprep.mubr.msk.f32.mxu1 %vm165_vm1, %v312_v12 }
 0x4c1   :  { %907 = vmatmul.mubr.msk.f32.vlgmr.msra.gmra.mrb[2].mxu1 %vm165_vm1, %v313_v43 }
 0x4c2   :  { %913 = vmatprep.mubr.msk.f32.mxu1 %vm165_vm1, %v448_v44 }
 0x4c5   :  { %960 = vmatpush3.bf16.xpose.msk.msra.mxu1 %vm1248_vm2, %v955_v40 }
 0x4cc   :  { %914 = vmatmul.mubr.msk.f32.vlgmr.msra.gmra.mrb[4].mxu1 %vm165_vm1, %v450_v45 }
 0x594   :  { %v908_v48 = vpop.f32.mrb[2].mxu1 }
 0x595   :  { %v394_v49 = vpop.f32.mrb[3].mxu1 }
 0x59f   :  { %v915_v50 = vpop.f32.mrb[4].mxu1 }
 0x5a0   :  { %v537_v51 = vadd.f32 %v915_v50, %v1261_v46  ;;  %v531_v52 = vpop.f32.mrb[5].mxu1 }
 0x5a1   :  { %v532_v53 = vadd.f32 %v531_v52, %v1266_v47 }
 0x5a2   :  { %v543_v54 = vsel %vm165_vm1, %v537_v51, -inf }
 0x5a3   :  { %544 = vmax.xlane.f32.xlu0 %v543_v54  ;;  %v540_v55 = vsel %vm165_vm1, %v532_v53, -inf }
 0x5a4   :  { %541 = vmax.xlane.f32.xlu1 %v540_v55 }
 0x630   :  { %v545_v56 = vpop.xlane.xlu0 %544 }
 0x631   :  { %v547_v41 = vsub.f32 %v537_v51, %v545_v56  ;;  %v542_v57 = vpop.xlane.xlu1 %541 }
 0x632   :  { %v546_v58 = vsub.f32 %v532_v53, %v542_v57 }
 0x633   :  { %v550_v59 = vmul.f32 1.442695, %v547_v41 }
 0x634   :  { %v548_v60 = vmul.f32 1.442695, %v546_v58 }
 0x635   :  { %1030 = vpow2.f32 %v550_v59 }
 0x636   :  { %1032 = vpow2.f32 %v548_v60 }
 0x63f   :  { %v1031_v61 = vpop.eup %1030 }
 0x640   :  { %v1033_v62 = vpop.eup %1032  ;;  %v555_v46 = vsel %vm165_vm1, %v1031_v61, 0.0 }
 0x641   :  { %556 = vadd.xlane.f32.xlu1 %v555_v46  ;;  %v552_v47 = vsel %vm165_vm1, %v1033_v62, 0.0 }
 0x642   :  { %553 = vadd.xlane.f32.xlu0 %v552_v47 }
 0x658   :  { %1002 = vrot.lane.b32.xlu0 %v991_v28, %s1133_s19 }
 0x6ce   :  { %v557_v63 = vpop.xlane.xlu1 %556 }
 0x6cf   :  { %1034 = vrcp.f32 %v557_v63  ;;  %v554_v0 = vpop.xlane.xlu0 %553 }
 0x6d0   :  { %1036 = vrcp.f32 %v554_v0 }
 0x6d3   :  { %v1003_v1 = vpop.permute.xlu0 %1002 }
 0x6d4   :  { %v1005_v4 = vunpack.i.h.bf16 %v1003_v1  ;;  %v1004_v5 = vunpack.i.l.bf16 %v1003_v1 }
 0x6d6   :  { %v961_v6 = vpack.c.bf16 %v1005_v4, %v1004_v5 }
 0x6d8   :  { %962 = vmatprep.subr.bf16.mxu0 %v961_v6 }
 0x6d9   :  { %v1035_v8 = vpop.eup %1034  ;;  %964 = vmatpush3.bf16.msra.mxu0 %v961_v6 }
 0x6da   :  { %v1037_v9 = vpop.eup %1036  ;;  %966 = vmatprep.subr.bf16.mxu0 %v965_v7  ;;  %v561_v13 = vmul.f32 %v1035_v8, %v1031_v61 }
 0x6db   :  { %v560_v10 = vmul.f32 %v1037_v9, %v1033_v62 }
 0x6dd   :  { %920 = vmatprep.mubr.msk.f32.mxu0 %vm165_vm1, %v560_v10 }
 0x6de   :  { %921 = vmatmul.mubr.msk.f32.vlgmr.msra.gmra.mrb[2].mxu0 %vm165_vm1, %v561_v13 }
 0x6df   :  { %968 = vmatpush3.bf16.msra.mxu0 %v965_v7 }
 0x6e0   :  { %970 = vmatprep.subr.bf16.mxu0 %v969_v16 }
 0x7b1   :  { %v922_v17 = vpop.f32.mrb[2].mxu0 }
 0x7b2   :  { %v640_v18 = vpop.f32.mrb[3].mxu0 }
 0x7b3   :  { %927 = vmatprep.mubr.msk.f32.mxu0 %vm165_vm1, %v640_v18 }
 0x7b4   :  { %928 = vmatmul.mubr.msk.f32.vlgmr.msra.gmra.mrb[4].mxu0 %vm165_vm1, %v922_v17 }
 0x7b5   :  { %972 = vmatpush3.bf16.msra.mxu0 %v969_v16  ;;  %934 = vmatprep.mubr.msk.f32.mxu0 %vm165_vm1, %v394_v49 }
 0x7bc   :  { %935 = vmatmul.mubr.msk.f32.vlgmr.msra.gmra.mrb[4].mxu0 %vm165_vm1, %v908_v48 }
 0x88f   :  { %v936_v19 = vpop.f32.mrb[4].mxu0 }
 0x890   :  { %814 = vst.msk [vmem:[#allocation9 + $0x8] sm:$0xff] %vm78_vm0, %v936_v19  ;;  %v804_v20 = vpop.f32.mrb[5].mxu0 }
 0x891   :  { %813 = vst.msk [vmem:[#allocation9] sm:$0xff] %vm78_vm0, %v804_v20 }
 0x892   :  { %1105 = shalt.err (!%p1102_p11)
}
 0x893   :  { %s1106_s1 = scalar_lea.hbm %s1330_s6, 256 }
 0x894   :  { %p1107_p12 = scmp.ne.s32.totalorder %s1330_s6, %s1106_s1  ;;  %p1110_p13 = scmp.lt.u32.totalorder %s1106_s1, %s1330_s6 }
 0x896   :  { %p1112_p0 = pnand %p1110_p13, %p1107_p12 }
 0x898   :  { %1115 = shalt.err (!%p1112_p0)
}
 0x899   :  { %826 = dma.vmem_to_hbm [thread:$0]  %s821_s21, 256, %s1330_s6, [#allocation4], %s1126_s11, %s1126_s11, %s1127_s12  }
 0x89a   :  { %1122 = dma.done.wait [#allocation4], 256  }
 0x89b   :  { %1123 = vsyncadd [#allocation4], 4294967040 }
 0x89c   :  { %830 = vsyncpa [#allocation3], 1 }
 0x89d   :  { %831 = vsyncpa [#allocation8], 1 }
 0x89e   :  { %832 = vsyncpa [#allocation4], 1 }
 0x89f   :  { %833 = vsyncpa [#allocation5], 1 }

</bundles_post_ra>
